<compile_context>
chip_gen: v7x
topology: tpu7x:2x2x1
jax: 0.10.0
libtpu: 0.0.40
codegen_flags: <defaults>
</compile_context>

<pallas_src>
import numpy as np

import jax
import jax.numpy as jnp
from jax.experimental import pallas as pl
from jax.experimental.pallas import tpu as pltpu

MAX_CAPTION_CHARS = 128   # one lane row (128 lanes) per caption
ROW_TILE = 32             # uint8 native tile is (32, 128) — pad batch to this
TILE_B_MAX = 8192         # rows per grid step => 1 MiB uint8 input block


def _round_up(x, m):
    return ((x + m - 1) // m) * m


def _reward_kernel(chars_ref, out_ref):
    """chars_ref: (TILE_B, 128) uint8 UTF-8 bytes (0-padded). out_ref: (TILE_B, 1) f32."""
    # 0/1 mask of non-whitespace bytes. 'byte > 32' excludes the zero padding
    # and ASCII whitespace (space, \t, \n, \r, \x0b, \x0c).
    is_word = (chars_ref[...].astype(jnp.int32) > 32).astype(jnp.int32)
    # prev[:, i] = is_word[:, i-1] via a single aligned XLU lane rotation.
    # Lane 0 wraps around to lane 127; mask it so lane 0 is "preceded by
    # whitespace" (a word byte at position 0 always starts a word).
    prev = pltpu.roll(is_word, shift=1, axis=1)
    lane = jax.lax.broadcasted_iota(jnp.int32, is_word.shape, 1)
    prev = jnp.where(lane == 0, 0, prev)
    # A word starts where a word byte is preceded by a non-word byte.
    starts = is_word * (1 - prev)
    n_words = jnp.sum(starts, axis=1, keepdims=True)
    out_ref[...] = n_words.astype(jnp.float32) * jnp.float32(0.1)


def encode_captions(captions):
    """Encode a list of caption strings into a (B_pad, 128) uint8 device array."""
    n = len(captions)
    if n <= TILE_B_MAX:
        n_pad = max(ROW_TILE, _round_up(n, ROW_TILE))
    else:
        n_pad = _round_up(n, TILE_B_MAX)
    # Bulk build: per-caption UTF-8 encode (unavoidable for Python strings),
    # then one join / one frombuffer / one reshape / one H2D transfer.
    rows = [c.encode("utf-8")[:MAX_CAPTION_CHARS].ljust(MAX_CAPTION_CHARS, b"\x00")
            for c in captions]
    rows.append(b"\x00" * (MAX_CAPTION_CHARS * (n_pad - n)))
    arr = np.frombuffer(b"".join(rows), dtype=np.uint8)
    arr = arr.reshape(n_pad, MAX_CAPTION_CHARS)
    return jnp.asarray(arr)


def init_params(key):
    """The module's Linear(768, 1); unused by forward (reference behavior)."""
    kw, kb = jax.random.split(key)
    w = jax.random.normal(kw, (768, 1), dtype=jnp.float32) * (1.0 / 768.0) ** 0.5
    b = jax.random.normal(kb, (1,), dtype=jnp.float32) * 0.01
    return {"linear_w": w, "linear_b": b}


def reward_model_forward(params, image, caption_codes, num_captions=1):
    """Pallas implementation of RewardModel.forward.

    `params` and `image` are accepted for interface parity with the PyTorch
    module but are not used by the forward pass (exactly as in the reference).
    `caption_codes` is a (B_pad, 128) uint8 array from `encode_captions`.
    Returns the first `num_captions` rewards as a float32 vector.
    """
    del params, image  # unused in the reference forward
    b = caption_codes.shape[0]
    tile_b = min(TILE_B_MAX, _round_up(b, ROW_TILE))
    b_pad = _round_up(b, tile_b)
    if b_pad != b:  # encode_captions already pads; this is just a safety net
        caption_codes = jnp.pad(caption_codes, ((0, b_pad - b), (0, 0)))
    out = pl.pallas_call(
        _reward_kernel,
        out_shape=jax.ShapeDtypeStruct((b_pad, 1), jnp.float32),
        grid=(b_pad // tile_b,),
        in_specs=[pl.BlockSpec((tile_b, MAX_CAPTION_CHARS), lambda i: (i, 0))],
        # (tile_b, 1) output block: lane width 1 -> masked stores, but output
        # bytes are 1/32 of input bytes, so this is not the bottleneck.
        out_specs=pl.BlockSpec((tile_b, 1), lambda i: (i, 0)),
        compiler_params=pltpu.CompilerParams(
            dimension_semantics=("parallel",),      # v7x: shard grid over 2 TCs
            vmem_limit_bytes=48 * 1024 * 1024,      # < 64 MiB physical on v7x
        ),
    )(caption_codes)
    return out[:num_captions, 0]   # (num_captions,)


if __name__ == "__main__":
    key = jax.random.PRNGKey(0)
    k_img, k_param = jax.random.split(key)

    # Shapes consistent with the module's signature; image is unused, as in torch.
    image = jax.random.normal(k_img, (2, 4, 16, 16), dtype=jnp.float32)
    params = init_params(k_param)  # Linear(768, 1); unused in forward

    # Single caption: matches torch.tensor([len(caption.split())/10.0]) -> (1,).
    caption = "a small red fox jumps over the lazy dog"
    codes = encode_captions([caption])
    reward = reward_model_forward(params, image, codes, num_captions=1)
    reward = jax.block_until_ready(reward)

    expected = len(caption.split()) / 10.0
    assert reward.shape == (1,), reward.shape
    assert abs(float(reward[0]) - expected) < 1e-6, (float(reward[0]), expected)

    # Batched use: many captions amortize one launch + pipelined HBM->VMEM DMA.
    captions = [
        "a small red fox jumps over the lazy dog",
        "hello world",
        "  leading   and   multiple   spaces  ",
        "single",
        "",               # empty caption -> 0 words
        "x" * 127,        # one maximal-length word
        "y" * 128,        # fills all 128 lanes -> exercises the lane-0 wrap mask
    ]
    codes_b = encode_captions(captions)
    rewards = reward_model_forward(params, image, codes_b, num_captions=len(captions))
    rewards = jax.block_until_ready(rewards)
    for r, cap in zip(np.asarray(rewards), captions):
        exp = len(cap.split()) / 10.0
        assert abs(float(r) - exp) < 1e-6, (cap, float(r), exp)

    print("KERNEL_OK")
</pallas_src>

<mosaic_0001>
module attributes {stable_mosaic.version = 11 : i64} {
  func.func @_reward_kernel(%arg0: i32, %arg1: memref<32x128xi8, #tpu.memory_space<vmem>>, %arg2: memref<32x1xf32, #tpu.memory_space<vmem>>) attributes {dimension_semantics = [#tpu.dimension_semantics<parallel>], iteration_bounds = array<i64: 1>, scalar_prefetch = 0 : i64, scratch_operands = 0 : i64, tpu.core_type = #tpu.core_type<tc>, window_params = [{transform_indices = @transform_0, window_bounds = array<i64: 32, 128>}, {transform_indices = @transform_1, window_bounds = array<i64: 32, 1>}]} {
    %c0 = arith.constant 0 : index
    %c0_0 = arith.constant 0 : index
    %0 = vector.load %arg1[%c0, %c0_0] : memref<32x128xi8, #tpu.memory_space<vmem>>, vector<32x128xi8>
    %1 = arith.extui %0 : vector<32x128xi8> to vector<32x128xi32>
    %c32_i32 = arith.constant 32 : i32
    %2 = vector.broadcast %c32_i32 : i32 to vector<32x128xi32>
    %3 = arith.cmpi sgt, %1, %2 : vector<32x128xi32>
    %4 = arith.extui %3 : vector<32x128xi1> to vector<32x128xi32>
    %c1_i32 = arith.constant 1 : i32
    %5 = tpu.dynamic_rotate %4 by %c1_i32 dim 1 : vector<32x128xi32>, i32 -> vector<32x128xi32>
    %6 = tpu.iota {dimensions = array<i32: 1>} : vector<32x128xi32>
    %c0_i32 = arith.constant 0 : i32
    %7 = vector.broadcast %c0_i32 : i32 to vector<32x128xi32>
    %8 = arith.cmpi eq, %6, %7 : vector<32x128xi32>
    %c0_i32_1 = arith.constant 0 : i32
    %9 = vector.broadcast %c0_i32_1 : i32 to vector<32x128xi32>
    %10 = arith.select %8, %9, %5 : vector<32x128xi1>, vector<32x128xi32>
    %c1_i32_2 = arith.constant 1 : i32
    %11 = vector.broadcast %c1_i32_2 : i32 to vector<32x128xi32>
    %12 = arith.subi %11, %10 : vector<32x128xi32>
    %13 = arith.muli %4, %12 : vector<32x128xi32>
    %cst = arith.constant dense<0> : vector<32xi32>
    %14 = vector.multi_reduction <add>, %13, %cst [1] : vector<32x128xi32> to vector<32xi32>
    %15 = vector.shape_cast %14 : vector<32xi32> to vector<32x1xi32>
    %16 = arith.sitofp %15 : vector<32x1xi32> to vector<32x1xf32>
    %cst_3 = arith.constant 1.000000e-01 : f32
    %17 = vector.broadcast %cst_3 : f32 to vector<32x1xf32>
    %18 = arith.mulf %16, %17 : vector<32x1xf32>
    %c0_4 = arith.constant 0 : index
    %c0_5 = arith.constant 0 : index
    %19 = vector.load %arg2[%c0_4, %c0_5] : memref<32x1xf32, #tpu.memory_space<vmem>>, vector<32x1xf32>
    tpu.vector_store %arg2[%c0_4, %c0_5], %18 {strides = array<i32>} : memref<32x1xf32, #tpu.memory_space<vmem>>, vector<32x1xf32>,
    return
  }
  func.func @transform_0(%arg0: i32) -> (i32, i32) {
    %c0_i32 = arith.constant 0 : i32
    %c0_i32_0 = arith.constant 0 : i32
    return %arg0, %c0_i32 : i32, i32
  }
  func.func @transform_1(%arg0: i32) -> (i32, i32) {
    %c0_i32 = arith.constant 0 : i32
    %c0_i32_0 = arith.constant 0 : i32
    return %arg0, %c0_i32 : i32, i32
  }
}

</mosaic_0001>

<bundles_post_ra>
// kernel: tpu_custom_call.1
= control target key start
LH: loop header
LB: loop body
LE: loop exit
PB: predicated region body
PF: predicated region fallthrough
CT: control target
= control target key end

     0   :  { %6 = vsyncpa [#allocation3], 0  ;;  %s153_s6 = smov [#allocation2]   ;;  %s194_s0 = inlined_call_operand.hbm [shape: u8[32,128], index: 0, kind: input, shape index: {}]   ;;  %s195_s1 = inlined_call_operand.vmem [shape: f32[32,1], index: 1, kind: output, shape index: {}]  }
   0x1   :  { %s13_s7 = sshll.u32 %s153_s6, 4  ;;  %s129_s10 = scalar_lea.hbm %s194_s0, 128  ;;  %s14_s7 = int_to_ptr.vmem [resolvable:$true] %s13_s7 }
   0x2   :  { %p130_p0 = scmp.ne.s32.totalorder %s194_s0, %s129_s10  ;;  %p133_p1 = scmp.lt.u32.totalorder %s129_s10, %s194_s0 }
   0x4   :  { %p135_p2 = pnand %p133_p1, %p130_p0 }
   0x6   :  { %138 = shalt.err (!%p135_p2)
}
   0x7   :  { %s139_s15 = scalar_lea.vmem %s14_s7, 128  ;;  %p144_p4 = scmp.lt.s32.totalorder %s14_s7, %s14_s7 }
   0x8   :  { %p140_p3 = scmp.ne.s32.totalorder %s14_s7, %s139_s15  ;;  %p145_p5 = scmp.lt.s32.totalorder %s139_s15, %s139_s15 }
   0xa   :  { %p146_p6 = por %p145_p5, %p144_p4 }
   0xc   :  { %p147_p7 = pnand %p146_p6, %p140_p3 }
   0xe   :  { %150 = shalt.err (!%p147_p7)
}
   0xf   :  { %16 = dma.hbm_to_vmem [thread:$0]  %s194_s0, 128, %s14_s7, [#allocation3]  }
  0x10   :  { %151 = dma.done.wait [#allocation3], 128  }
  0x11   :  { %152 = vsyncadd [#allocation3], 4294967168  ;;  %v20_v0 = vld [vmem:[#allocation2] sm:$0xff]  ;;  %v154_v9 = vmov 0   ;;  %s155_s18 = smov 1   ;;  %v45_v14 = vlaneseq  ;;  %vm116_vm5 = vcmask 7168  }
  0x12   :  { %v21_v1 = vunpack.c.0.s8 %v20_v0  ;;  %v23_v2 = vunpack.c.2.s8 %v20_v0  ;;  %v22_v3 = vunpack.c.1.s8 %v20_v0  ;;  %v24_v4 = vunpack.c.3.s8 %v20_v0 }
  0x13   :  { %v46_v15 = vand.u32 127, %v45_v14 }
  0x14   :  { %v25_v5 = vand.u32 255, %v21_v1  ;;  %v27_v6 = vand.u32 255, %v23_v2  ;;  %v26_v7 = vand.u32 255, %v22_v3  ;;  %v28_v8 = vand.u32 255, %v24_v4 }
  0x15   :  { %vm47_vm4 = vcmp.eq.s32.totalorder %v46_v15, 0 }
  0x16   :  { %vm29_vm0 = vcmp.gt.s32.totalorder %v25_v5, 32  ;;  %vm31_vm1 = vcmp.gt.s32.totalorder %v27_v6, 32  ;;  %vm30_vm2 = vcmp.gt.s32.totalorder %v26_v7, 32  ;;  %vm32_vm3 = vcmp.gt.s32.totalorder %v28_v8, 32 }
  0x17   :  { %v33_v10 = vsel %vm29_vm0, 1, %v154_v9  ;;  %v35_v11 = vsel %vm31_vm1, 1, %v154_v9  ;;  %v34_v12 = vsel %vm30_vm2, 1, %v154_v9  ;;  %v36_v13 = vsel %vm32_vm3, 1, %v154_v9 }
  0x18   :  { %37 = vrot.lane.b32.xlu0 %v33_v10, %s155_s18  ;;  %41 = vrot.lane.b32.xlu1 %v35_v11, %s155_s18 }
  0x1c   :  { %39 = vrot.lane.b32.xlu0 %v34_v12, %s155_s18  ;;  %43 = vrot.lane.b32.xlu1 %v36_v13, %s155_s18 }
  0x8a   :  { %v38_v16 = vpop.permute.xlu0 %37  ;;  %v42_v17 = vpop.permute.xlu1 %41 }
  0x8b   :  { %v48_v18 = vsel %vm47_vm4, 0, %v38_v16  ;;  %v50_v19 = vsel %vm47_vm4, 0, %v42_v17 }
  0x8c   :  { %v52_v20 = vsub.s32 1, %v48_v18  ;;  %v54_v21 = vsub.s32 1, %v50_v19 }
  0x8e   :  { %v56_v22 = vmul.u32 %v52_v20, %v33_v10  ;;  %v58_v23 = vmul.u32 %v54_v21, %v35_v11  ;;  %v40_v24 = vpop.permute.xlu0 %39  ;;  %v44_v25 = vpop.permute.xlu1 %43 }
  0x8f   :  { %v49_v26 = vsel %vm47_vm4, 0, %v40_v24  ;;  %v51_v27 = vsel %vm47_vm4, 0, %v44_v25 }
  0x90   :  { %v53_v28 = vsub.s32 1, %v49_v26  ;;  %v55_v29 = vsub.s32 1, %v51_v27  ;;  %v61_v30 = vshrl.u32 %v56_v22, 16  ;;  %v85_v31 = vshrl.u32 %v58_v23, 16 }
  0x91   :  { %v60_v39 = vand.u32 65535, %v56_v22  ;;  %v84_v42 = vand.u32 65535, %v58_v23 }
  0x92   :  { %v57_v32 = vmul.u32 %v53_v28, %v34_v12  ;;  %v59_v33 = vmul.u32 %v55_v29, %v36_v13  ;;  %v63_v34 = vcvt.s32.f32 %v61_v30  ;;  %v87_v35 = vcvt.s32.f32 %v85_v31 }
  0x93   :  { %v62_v41 = vcvt.s32.f32 %v60_v39  ;;  %v86_v44 = vcvt.s32.f32 %v84_v42 }
  0x94   :  { %66 = vadd.xlane.f32.xlu0 %v63_v34  ;;  %v73_v36 = vshrl.u32 %v57_v32, 16  ;;  %v97_v37 = vshrl.u32 %v59_v33, 16  ;;  %v72_v43 = vand.u32 65535, %v57_v32  ;;  %v96_v46 = vand.u32 65535, %v59_v33 }
  0x96   :  { %v75_v38 = vcvt.s32.f32 %v73_v36  ;;  %v99_v40 = vcvt.s32.f32 %v97_v37  ;;  %v74_v45 = vcvt.s32.f32 %v72_v43  ;;  %v98_v47 = vcvt.s32.f32 %v96_v46 }
  0x98   :  { %90 = vadd.xlane.f32.xlu0 %v87_v35  ;;  %78 = vadd.xlane.f32.xlu1 %v75_v38 }
  0x9c   :  { %102 = vadd.xlane.f32.xlu0 %v99_v40  ;;  %64 = vadd.xlane.f32.xlu1 %v62_v41 }
  0xa0   :  { %88 = vadd.xlane.f32.xlu1 %v86_v44  ;;  %76 = vadd.xlane.f32.xlu0 %v74_v45 }
  0xa4   :  { %100 = vadd.xlane.f32.xlu0 %v98_v47 }
 0x121   :  { %v67_v48 = vpop.xlane.xlu0 %66 }
 0x122   :  { %v69_v51 = vcvt.f32.s32 %v67_v48 }
 0x124   :  { %v70_v56 = vshll.u32 %v69_v51, 16 }
 0x125   :  { %v79_v49 = vpop.xlane.xlu1 %78  ;;  %v91_v50 = vpop.xlane.xlu0 %90 }
 0x126   :  { %v81_v52 = vcvt.f32.s32 %v79_v49  ;;  %v93_v53 = vcvt.f32.s32 %v91_v50 }
 0x128   :  { %v82_v59 = vshll.u32 %v81_v52, 16  ;;  %v94_v60 = vshll.u32 %v93_v53, 16 }
 0x129   :  { %v65_v54 = vpop.xlane.xlu1 %64  ;;  %v103_v55 = vpop.xlane.xlu0 %102 }
 0x12a   :  { %v68_v57 = vcvt.f32.s32 %v65_v54  ;;  %v105_v0 = vcvt.f32.s32 %v103_v55 }
 0x12c   :  { %v71_v58 = vadd.s32 %v70_v56, %v68_v57  ;;  %v106_v7 = vshll.u32 %v105_v0, 16 }
 0x12d   :  { %v89_v61 = vpop.xlane.xlu1 %88  ;;  %v77_v62 = vpop.xlane.xlu0 %76 }
 0x12e   :  { %v108_v63 = vcvt.s32.f32 %v71_v58  ;;  %v92_v1 = vcvt.f32.s32 %v89_v61  ;;  %v80_v2 = vcvt.f32.s32 %v77_v62 }
 0x130   :  { %v112_v3 = vmul.f32 0.1, %v108_v63  ;;  %v95_v4 = vadd.s32 %v94_v60, %v92_v1  ;;  %v83_v5 = vadd.s32 %v82_v59, %v80_v2 }
 0x131   :  { %v101_v6 = vpop.xlane.xlu0 %100 }
 0x132   :  { %117 = vst.msk [vmem:[%s195_s1] sm:$0xff] %vm116_vm5, %v112_v3  ;;  %v110_v8 = vcvt.s32.f32 %v95_v4  ;;  %v109_v9 = vcvt.s32.f32 %v83_v5  ;;  %v104_v10 = vcvt.f32.s32 %v101_v6 }
 0x134   :  { %v114_v11 = vmul.f32 0.1, %v110_v8  ;;  %v113_v12 = vmul.f32 0.1, %v109_v9  ;;  %v107_v13 = vadd.s32 %v106_v7, %v104_v10 }
 0x136   :  { %119 = vst.msk [vmem:[%s195_s1 + $0x10] sm:$0xff] %vm116_vm5, %v114_v11  ;;  %118 = vst.msk [vmem:[%s195_s1 + $0x8] sm:$0xff] %vm116_vm5, %v113_v12  ;;  %v111_v14 = vcvt.s32.f32 %v107_v13 }
 0x138   :  { %v115_v15 = vmul.f32 0.1, %v111_v14 }
 0x13a   :  { %120 = vst.msk [vmem:[%s195_s1 + $0x18] sm:$0xff] %vm116_vm5, %v115_v15 }
 0x13b   :  { %125 = vsyncpa [#allocation3], 1 }

</bundles_post_ra>
